<compile_context>
chip_gen: v7x
topology: tpu7x:2x2x1
jax: 0.10.0
libtpu: 0.0.40
codegen_flags: <defaults>
</compile_context>

<pallas_src>
import math
from typing import NamedTuple

import jax
import jax.numpy as jnp
from jax.experimental import pallas as pl
from jax.experimental.pallas import tpu as pltpu

LANE = 128          # lane-dense target for matmul N dims and the output store
SUBLANE_BF16 = 16   # bf16 packs 16 rows per vreg along the sublane axis
TILE_B = 256        # batch-tile sweep knob (256-512 sweet spot; >512 risks f32 spills)
_MIB = 1024 * 1024


def _round_up(x, m):
    return ((x + m - 1) // m) * m


def _policy_kernel(sb_ref, x_ref, w1_ref, b1_ref, w2_ref, b2_ref,
                   w3_ref, b3_ref, out_ref):
    """mean = tanh(relu(relu(x@w1+b1)@w2+b2)@w3+b3) * scale + bias."""
    scale = sb_ref[0]
    bias = sb_ref[1]

    x = x_ref[...]                                       # (tile_b, in_p) bf16
    # MXU dots take bf16 inputs and accumulate in f32.  The elementwise chain
    # stays f32 so the same kernel runs on v5e (no bf16 VPU/EUP path there);
    # on v6e/v7x it could be done in bf16 to halve VPU passes.
    h1 = jnp.dot(x, w1_ref[...], preferred_element_type=jnp.float32) + b1_ref[...]
    h1 = jnp.maximum(h1, 0.0)                            # relu(linear1)
    h2 = jnp.dot(h1.astype(jnp.bfloat16), w2_ref[...],
                 preferred_element_type=jnp.float32) + b2_ref[...]
    h2 = jnp.maximum(h2, 0.0)                            # relu(linear2)
    m = jnp.dot(h2.astype(jnp.bfloat16), w3_ref[...],
                preferred_element_type=jnp.float32) + b3_ref[...]
    # tanh -> EUP slot, mul/add -> VPU slot: free filler alongside the MXU.
    out_ref[...] = (jnp.tanh(m) * scale + bias).astype(out_ref.dtype)


class PreparedPolicyParams(NamedTuple):
    w1: jax.Array
    b1: jax.Array
    w2: jax.Array
    b2: jax.Array
    w3: jax.Array
    b3: jax.Array
    num_inputs: int
    num_actions: int


def prepare_params(params):
    """Pad + cast the weights once; cache the result across forward calls."""
    w1, b1, w2, b2, w3, b3 = params
    num_inputs, hidden_dim = w1.shape
    num_actions = w3.shape[1]

    in_p = _round_up(num_inputs, SUBLANE_BF16)   # K dim: sublane-only padding
    h_p = _round_up(hidden_dim, LANE)            # matmul N dims: lane-dense
    a_p = _round_up(num_actions, LANE)

    def pad2(a, rows, cols, dtype):
        a = jnp.asarray(a, dtype)
        return jnp.pad(a, ((0, rows - a.shape[0]), (0, cols - a.shape[1])))

    return PreparedPolicyParams(
        w1=pad2(w1, in_p, h_p, jnp.bfloat16),
        b1=pad2(b1, 1, h_p, jnp.float32),
        w2=pad2(w2, h_p, h_p, jnp.bfloat16),
        b2=pad2(b2, 1, h_p, jnp.float32),
        w3=pad2(w3, h_p, a_p, jnp.bfloat16),
        b3=pad2(b3, 1, a_p, jnp.float32),
        num_inputs=num_inputs,
        num_actions=num_actions,
    )


def _choose_batch_tiling(batch):
    """Pick (tile_b, padded_batch).  Large tiles amortize the ~0.35us per-grid-
    step overhead; mid-size batches use exactly two tiles so the 'parallel'
    batch axis feeds both v7x TensorCores."""
    b16 = _round_up(max(int(batch), 1), SUBLANE_BF16)
    if b16 <= TILE_B:
        return b16, b16
    if b16 <= 2 * TILE_B:
        tile = _round_up((b16 + 1) // 2, SUBLANE_BF16)
        return tile, 2 * tile
    return TILE_B, _round_up(b16, TILE_B)


def deterministic_policy_forward(state, params, action_scale=1.0,
                                 action_bias=0.0, out_dtype=jnp.float32):
    """Pallas implementation of DeterministicPolicy.forward (action_space=None).

    `params` may be the raw (w1, b1, w2, b2, w3, b3) f32 tuple or an already
    cached PreparedPolicyParams (preferred inside a tight inference loop).
    Pass out_dtype=jnp.bfloat16 to cut output HBM traffic if downstream allows.
    """
    prepared = params if isinstance(params, PreparedPolicyParams) else prepare_params(params)
    w1, b1, w2, b2, w3, b3 = prepared[:6]

    B, num_inputs = state.shape
    assert num_inputs == prepared.num_inputs
    in_p, h_p = w1.shape
    a_p = w3.shape[1]

    tile_b, b_p = _choose_batch_tiling(B)
    grid = (b_p // tile_b,)

    # Only the activation needs a per-call pad/cast; weights are pre-padded.
    x_p = jnp.pad(state.astype(jnp.bfloat16),
                  ((0, b_p - B), (0, in_p - num_inputs)))
    scale_bias = jnp.asarray([action_scale, action_bias], jnp.float32)

    out_itemsize = jnp.dtype(out_dtype).itemsize
    weight_bytes = sum(int(a.size) * a.dtype.itemsize
                       for a in (w1, b1, w2, b2, w3, b3))
    # Single-buffer the VMEM-resident weights only when the duplicate copy of
    # the default 2-deep pipeline would cost meaningful VMEM headroom.
    single_buffer_weights = weight_bytes > 2 * _MIB

    def resident(shape):
        if single_buffer_weights:
            return pl.BlockSpec(shape, lambda i: (0, 0),
                                pipeline_mode=pl.Buffered(1))
        return pl.BlockSpec(shape, lambda i: (0, 0))

    # Rough VMEM footprint: resident weights (+duplicate if double-buffered),
    # double-buffered x/out tiles, f32 intermediates.
    vmem_est = (weight_bytes * (1 if single_buffer_weights else 2)
                + 2 * tile_b * in_p * 2
                + 2 * tile_b * a_p * out_itemsize
                + 3 * tile_b * h_p * 4)
    cp_kwargs = dict(dimension_semantics=("parallel",))
    if vmem_est > 12 * _MIB:
        # Raise v5e's 16 MiB default scoped-VMEM limit; stay well under v7x's
        # 64 MiB physical VMEM (per TensorCore).
        cp_kwargs["vmem_limit_bytes"] = int(min(max(2 * vmem_est, 32 * _MIB),
                                                56 * _MIB))

    out = pl.pallas_call(
        _policy_kernel,
        out_shape=jax.ShapeDtypeStruct((b_p, a_p), out_dtype),
        grid=grid,
        in_specs=[
            # action_scale / action_bias scalars live in SMEM (changing them
            # does not recompile the kernel).
            pl.BlockSpec(memory_space=pltpu.MemorySpace.SMEM),
            # state: tiled along batch only; its K dim keeps the (sublane
            # padded) native width -- no 128-lane inflation of the HBM read.
            pl.BlockSpec((tile_b, in_p), lambda i: (i, 0)),
            # weights/biases: constant index_map -> VMEM-resident across tiles.
            resident((in_p, h_p)),
            resident((1, h_p)),
            resident((h_p, h_p)),
            resident((1, h_p)),
            resident((h_p, a_p)),
            resident((1, a_p)),
        ],
        out_specs=pl.BlockSpec((tile_b, a_p), lambda i: (i, 0)),
        compiler_params=pltpu.CompilerParams(**cp_kwargs),
    )(scale_bias, x_p, w1, b1, w2, b2, w3, b3)

    # Drop batch padding and zero-padded action lanes.
    return out[:B, :prepared.num_actions]


def xavier_uniform(key, fan_in, fan_out, gain=1.0):
    # Matches torch.nn.init.xavier_uniform_ with gain=1.
    limit = gain * math.sqrt(6.0 / (fan_in + fan_out))
    return jax.random.uniform(key, (fan_in, fan_out), jnp.float32, -limit, limit)


def init_params(key, num_inputs, num_actions, hidden_dim):
    k1, k2, k3 = jax.random.split(key, 3)
    w1 = xavier_uniform(k1, num_inputs, hidden_dim)
    b1 = jnp.zeros((1, hidden_dim), jnp.float32)     # constant_(bias, 0)
    w2 = xavier_uniform(k2, hidden_dim, hidden_dim)
    b2 = jnp.zeros((1, hidden_dim), jnp.float32)
    w3 = xavier_uniform(k3, hidden_dim, num_actions)
    b3 = jnp.zeros((1, num_actions), jnp.float32)
    return (w1, b1, w2, b2, w3, b3)


def reference_forward(state, params, action_scale=1.0, action_bias=0.0):
    # Pure f32 reference of the PyTorch forward.
    w1, b1, w2, b2, w3, b3 = params
    h1 = jnp.maximum(state @ w1 + b1, 0.0)
    h2 = jnp.maximum(h1 @ w2 + b2, 0.0)
    return jnp.tanh(h2 @ w3 + b3) * action_scale + action_bias


if __name__ == "__main__":
    num_inputs, num_actions, hidden_dim, batch = 16, 8, 32, 2

    key = jax.random.PRNGKey(0)
    pkey, skey = jax.random.split(key)
    raw_params = init_params(pkey, num_inputs, num_actions, hidden_dim)
    state = jax.random.normal(skey, (batch, num_inputs), jnp.float32)

    # Pad/cast the weights once; reuse across forward calls (perf feedback).
    prepared = prepare_params(raw_params)

    out = deterministic_policy_forward(state, prepared)
    out = jax.block_until_ready(out)

    ref = reference_forward(state, raw_params)
    assert out.shape == (batch, num_actions), out.shape
    # bf16 MXU inputs (f32 accumulation) vs f32 reference; tanh output <= 1.
    max_err = jnp.max(jnp.abs(out - ref))
    assert jnp.allclose(out, ref, atol=3e-2, rtol=3e-2), f"max abs err {max_err}"
    print("KERNEL_OK")
</pallas_src>

<mosaic_0001>
module attributes {stable_mosaic.version = 11 : i64} {
  func.func @_policy_kernel(%arg0: i32, %arg1: memref<2xf32, #tpu.memory_space<smem>>, %arg2: memref<16x16xbf16, #tpu.memory_space<vmem>>, %arg3: memref<16x128xbf16, #tpu.memory_space<vmem>>, %arg4: memref<1x128xf32, #tpu.memory_space<vmem>>, %arg5: memref<128x128xbf16, #tpu.memory_space<vmem>>, %arg6: memref<1x128xf32, #tpu.memory_space<vmem>>, %arg7: memref<128x128xbf16, #tpu.memory_space<vmem>>, %arg8: memref<1x128xf32, #tpu.memory_space<vmem>>, %arg9: memref<16x128xf32, #tpu.memory_space<vmem>>) attributes {dimension_semantics = [#tpu.dimension_semantics<parallel>], iteration_bounds = array<i64: 1>, scalar_prefetch = 0 : i64, scratch_operands = 0 : i64, tpu.core_type = #tpu.core_type<tc>, window_params = [{transform_indices = @transform_0, window_bounds = array<i64: 2>}, {transform_indices = @transform_1, window_bounds = array<i64: 16, 16>}, {pipeline_mode = #tpu.pipeline_mode<synchronous>, transform_indices = @transform_2, window_bounds = array<i64: 16, 128>}, {pipeline_mode = #tpu.pipeline_mode<synchronous>, transform_indices = @transform_3, window_bounds = array<i64: 1, 128>}, {pipeline_mode = #tpu.pipeline_mode<synchronous>, transform_indices = @transform_4, window_bounds = array<i64: 128, 128>}, {pipeline_mode = #tpu.pipeline_mode<synchronous>, transform_indices = @transform_5, window_bounds = array<i64: 1, 128>}, {pipeline_mode = #tpu.pipeline_mode<synchronous>, transform_indices = @transform_6, window_bounds = array<i64: 128, 128>}, {pipeline_mode = #tpu.pipeline_mode<synchronous>, transform_indices = @transform_7, window_bounds = array<i64: 1, 128>}, {transform_indices = @transform_8, window_bounds = array<i64: 16, 128>}]} {
    %c0 = arith.constant 0 : index
    %0 = memref.load %arg1[%c0] : memref<2xf32, #tpu.memory_space<smem>>
    %c1 = arith.constant 1 : index
    %1 = memref.load %arg1[%c1] : memref<2xf32, #tpu.memory_space<smem>>
    %c0_0 = arith.constant 0 : index
    %c0_1 = arith.constant 0 : index
    %2 = vector.load %arg2[%c0_0, %c0_1] : memref<16x16xbf16, #tpu.memory_space<vmem>>, vector<16x16xbf16>
    %c0_2 = arith.constant 0 : index
    %c0_3 = arith.constant 0 : index
    %3 = vector.load %arg3[%c0_2, %c0_3] : memref<16x128xbf16, #tpu.memory_space<vmem>>, vector<16x128xbf16>
    %cst = arith.constant dense<0.000000e+00> : vector<16x128xf32>
    %4 = tpu.matmul %2, %3, %cst {dimension_numbers = #tpu.dot_dimension_numbers<[1], [0], [0], [1], [0, 0, 1, 1], [], []>} : vector<16x16xbf16>, vector<16x128xbf16>, vector<16x128xf32> -> vector<16x128xf32>
    %c0_4 = arith.constant 0 : index
    %c0_5 = arith.constant 0 : index
    %5 = vector.load %arg4[%c0_4, %c0_5] : memref<1x128xf32, #tpu.memory_space<vmem>>, vector<1x128xf32>
    %6 = vector.broadcast %5 : vector<1x128xf32> to vector<16x128xf32>
    %7 = arith.addf %4, %6 : vector<16x128xf32>
    %cst_6 = arith.constant 0.000000e+00 : f32
    %8 = vector.broadcast %cst_6 : f32 to vector<16x128xf32>
    %9 = arith.maximumf %7, %8 : vector<16x128xf32>
    %10 = arith.truncf %9 : vector<16x128xf32> to vector<16x128xbf16>
    %c0_7 = arith.constant 0 : index
    %c0_8 = arith.constant 0 : index
    %11 = vector.load %arg5[%c0_7, %c0_8] : memref<128x128xbf16, #tpu.memory_space<vmem>>, vector<128x128xbf16>
    %cst_9 = arith.constant dense<0.000000e+00> : vector<16x128xf32>
    %12 = tpu.matmul %10, %11, %cst_9 {dimension_numbers = #tpu.dot_dimension_numbers<[1], [0], [0], [1], [0, 0, 1, 1], [], []>} : vector<16x128xbf16>, vector<128x128xbf16>, vector<16x128xf32> -> vector<16x128xf32>
    %c0_10 = arith.constant 0 : index
    %c0_11 = arith.constant 0 : index
    %13 = vector.load %arg6[%c0_10, %c0_11] : memref<1x128xf32, #tpu.memory_space<vmem>>, vector<1x128xf32>
    %14 = vector.broadcast %13 : vector<1x128xf32> to vector<16x128xf32>
    %15 = arith.addf %12, %14 : vector<16x128xf32>
    %cst_12 = arith.constant 0.000000e+00 : f32
    %16 = vector.broadcast %cst_12 : f32 to vector<16x128xf32>
    %17 = arith.maximumf %15, %16 : vector<16x128xf32>
    %18 = arith.truncf %17 : vector<16x128xf32> to vector<16x128xbf16>
    %c0_13 = arith.constant 0 : index
    %c0_14 = arith.constant 0 : index
    %19 = vector.load %arg7[%c0_13, %c0_14] : memref<128x128xbf16, #tpu.memory_space<vmem>>, vector<128x128xbf16>
    %cst_15 = arith.constant dense<0.000000e+00> : vector<16x128xf32>
    %20 = tpu.matmul %18, %19, %cst_15 {dimension_numbers = #tpu.dot_dimension_numbers<[1], [0], [0], [1], [0, 0, 1, 1], [], []>} : vector<16x128xbf16>, vector<128x128xbf16>, vector<16x128xf32> -> vector<16x128xf32>
    %c0_16 = arith.constant 0 : index
    %c0_17 = arith.constant 0 : index
    %21 = vector.load %arg8[%c0_16, %c0_17] : memref<1x128xf32, #tpu.memory_space<vmem>>, vector<1x128xf32>
    %22 = vector.broadcast %21 : vector<1x128xf32> to vector<16x128xf32>
    %23 = arith.addf %20, %22 : vector<16x128xf32>
    %24 = math.tanh %23 : vector<16x128xf32>
    %25 = vector.broadcast %0 : f32 to vector<16x128xf32>
    %26 = arith.mulf %24, %25 : vector<16x128xf32>
    %27 = vector.broadcast %1 : f32 to vector<16x128xf32>
    %28 = arith.addf %26, %27 : vector<16x128xf32>
    %c0_18 = arith.constant 0 : index
    %c0_19 = arith.constant 0 : index
    %29 = vector.load %arg9[%c0_18, %c0_19] : memref<16x128xf32, #tpu.memory_space<vmem>>, vector<16x128xf32>
    tpu.vector_store %arg9[%c0_18, %c0_19], %28 {strides = array<i32>} : memref<16x128xf32, #tpu.memory_space<vmem>>, vector<16x128xf32>,
    return
  }
  func.func @transform_0(%arg0: i32) -> i32 {
    %c0_i32 = arith.constant 0 : i32
    %c0_i32_0 = arith.constant 0 : i32
    return %c0_i32 : i32
  }
  func.func @transform_1(%arg0: i32) -> (i32, i32) {
    %c0_i32 = arith.constant 0 : i32
    %c0_i32_0 = arith.constant 0 : i32
    return %arg0, %c0_i32 : i32, i32
  }
  func.func @transform_2(%arg0: i32) -> (i32, i32) {
    %c0_i32 = arith.constant 0 : i32
    %c0_i32_0 = arith.constant 0 : i32
    %c0_i32_1 = arith.constant 0 : i32
    return %c0_i32, %c0_i32_0 : i32, i32
  }
  func.func @transform_3(%arg0: i32) -> (i32, i32) {
    %c0_i32 = arith.constant 0 : i32
    %c0_i32_0 = arith.constant 0 : i32
    %c0_i32_1 = arith.constant 0 : i32
    return %c0_i32, %c0_i32_0 : i32, i32
  }
  func.func @transform_4(%arg0: i32) -> (i32, i32) {
    %c0_i32 = arith.constant 0 : i32
    %c0_i32_0 = arith.constant 0 : i32
    %c0_i32_1 = arith.constant 0 : i32
    return %c0_i32, %c0_i32_0 : i32, i32
  }
  func.func @transform_5(%arg0: i32) -> (i32, i32) {
    %c0_i32 = arith.constant 0 : i32
    %c0_i32_0 = arith.constant 0 : i32
    %c0_i32_1 = arith.constant 0 : i32
    return %c0_i32, %c0_i32_0 : i32, i32
  }
  func.func @transform_6(%arg0: i32) -> (i32, i32) {
    %c0_i32 = arith.constant 0 : i32
    %c0_i32_0 = arith.constant 0 : i32
    %c0_i32_1 = arith.constant 0 : i32
    return %c0_i32, %c0_i32_0 : i32, i32
  }
  func.func @transform_7(%arg0: i32) -> (i32, i32) {
    %c0_i32 = arith.constant 0 : i32
    %c0_i32_0 = arith.constant 0 : i32
    %c0_i32_1 = arith.constant 0 : i32
    return %c0_i32, %c0_i32_0 : i32, i32
  }
  func.func @transform_8(%arg0: i32) -> (i32, i32) {
    %c0_i32 = arith.constant 0 : i32
    %c0_i32_0 = arith.constant 0 : i32
    return %arg0, %c0_i32 : i32, i32
  }
}

</mosaic_0001>

<bundles_post_ra>
// kernel: tpu_custom_call.1
= control target key start
LH: loop header
LB: loop body
LE: loop exit
PB: predicated region body
PF: predicated region fallthrough
CT: control target
= control target key end

     0   :  { %13 = vsyncpa [#allocation5], 0  ;;  %s849_s0 = inlined_call_operand.hbm [shape: f32[2], index: 0, kind: input, shape index: {}]   ;;  %s850_s1 = inlined_call_operand.hbm [shape: bf16[16,16], index: 1, kind: input, shape index: {}]   ;;  %s851_s2 = inlined_call_operand.hbm [shape: bf16[16,128], index: 2, kind: input, shape index: {}]   ;;  %s852_s3 = inlined_call_operand.vmem [shape: f32[1,128], index: 3, kind: input, shape index: {}]   ;;  %s853_s4 = inlined_call_operand.hbm [shape: bf16[128,128], index: 4, kind: input, shape index: {}]   ;;  %s854_s5 = inlined_call_operand.vmem [shape: f32[1,128], index: 5, kind: input, shape index: {}]   ;;  %s855_s6 = inlined_call_operand.hbm [shape: bf16[128,128], index: 6, kind: input, shape index: {}]   ;;  %s856_s7 = inlined_call_operand.vmem [shape: f32[1,128], index: 7, kind: input, shape index: {}]   ;;  %s857_s8 = inlined_call_operand.hbm [shape: f32[16,128], index: 8, kind: output, shape index: {}]  }
   0x1   :  { %14 = vsyncpa [#allocation3], 0 }
   0x2   :  { %15 = vsyncpa [#allocation8], 0 }
   0x3   :  { %16 = vsyncpa [#allocation11], 0 }
   0x4   :  { %17 = vsyncpa [#allocation4], 0  ;;  %s679_s27 = smov [#allocation7]   ;;  %s680_s29 = smov [#allocation6]  }
   0x5   :  { %s43_s28 = sshll.u32 %s679_s27, 4  ;;  %s31_s30 = sshll.u32 %s680_s29, 4  ;;  %s44_s28 = int_to_ptr.vmem [resolvable:$true] %s43_s28  ;;  %s32_s30 = int_to_ptr.vmem [resolvable:$true] %s31_s30 }
   0x6   :  { %s549_s11 = scalar_lea.hbm %s851_s2, 128 }
   0x7   :  { %p550_p0 = scmp.ne.s32.totalorder %s851_s2, %s549_s11  ;;  %p553_p1 = scmp.lt.u32.totalorder %s549_s11, %s851_s2 }
   0x9   :  { %p555_p2 = pnand %p553_p1, %p550_p0 }
   0xb   :  { %558 = shalt.err (!%p555_p2)
}
   0xc   :  { %s559_s16 = scalar_lea.vmem %s44_s28, 128  ;;  %p564_p4 = scmp.lt.s32.totalorder %s44_s28, %s44_s28 }
   0xd   :  { %p560_p3 = scmp.ne.s32.totalorder %s44_s28, %s559_s16  ;;  %p565_p5 = scmp.lt.s32.totalorder %s559_s16, %s559_s16 }
   0xf   :  { %p566_p6 = por %p565_p5, %p564_p4 }
  0x11   :  { %p567_p7 = pnand %p566_p6, %p560_p3 }
  0x13   :  { %570 = shalt.err (!%p567_p7)
}
  0x14   :  { %s681_s17 = smov 64   ;;  %s682_s18 = smov 4  }
  0x15   :  { %49 = dma.hbm_to_vmem [thread:$0]  %s851_s2, 128, %s44_s28, [#allocation8], %s681_s17, %s681_s17, %s682_s18  }
  0x16   :  { %s571_s23 = scalar_lea.hbm %s849_s0, 16 }
  0x17   :  { %p572_p8 = scmp.ne.s32.totalorder %s849_s0, %s571_s23  ;;  %p575_p9 = scmp.lt.u32.totalorder %s571_s23, %s849_s0 }
  0x19   :  { %p577_p10 = pnand %p575_p9, %p572_p8 }
  0x1b   :  { %580 = shalt.err (!%p577_p10)
}
  0x1c   :  { %s683_s29 = smov [#allocation2]   ;;  %s581_s11 = scalar_lea.hbm %s850_s1, 128 }
  0x1d   :  { %25 = dma.hbm_to_smem %s849_s0, 16, %s683_s29, [#allocation5]  }
  0x1e   :  { %p582_p11 = scmp.ne.s32.totalorder %s850_s1, %s581_s11  ;;  %p585_p12 = scmp.lt.u32.totalorder %s581_s11, %s850_s1 }
  0x20   :  { %p587_p13 = pnand %p585_p12, %p582_p11 }
  0x22   :  { %590 = shalt.err (!%p587_p13)
}
  0x23   :  { %s591_s16 = scalar_lea.vmem %s32_s30, 128  ;;  %p596_p1 = scmp.lt.s32.totalorder %s32_s30, %s32_s30 }
  0x24   :  { %p592_p0 = scmp.ne.s32.totalorder %s32_s30, %s591_s16  ;;  %p597_p2 = scmp.lt.s32.totalorder %s591_s16, %s591_s16 }
  0x26   :  { %p598_p3 = por %p597_p2, %p596_p1 }
  0x28   :  { %p599_p4 = pnand %p598_p3, %p592_p0 }
  0x2a   :  { %602 = shalt.err (!%p599_p4)
}
  0x2b   :  { %37 = dma.hbm_to_vmem [thread:$0]  %s850_s1, 128, %s32_s30, [#allocation3], %s681_s17, %s681_s17, %s682_s18  }
  0x2c   :  { %s684_s20 = smov [#allocation9]   ;;  %s685_s22 = smov [#allocation10]  }
  0x2d   :  { %s57_s21 = sshll.u32 %s684_s20, 4  ;;  %s71_s23 = sshll.u32 %s685_s22, 4  ;;  %s58_s21 = int_to_ptr.vmem [resolvable:$true] %s57_s21  ;;  %s72_s23 = int_to_ptr.vmem [resolvable:$true] %s71_s23 }
  0x2e   :  { %s603_s26 = scalar_lea.hbm %s853_s4, 1024 }
  0x2f   :  { %p604_p5 = scmp.ne.s32.totalorder %s853_s4, %s603_s26  ;;  %p607_p6 = scmp.lt.u32.totalorder %s603_s26, %s853_s4 }
  0x31   :  { %p609_p7 = pnand %p607_p6, %p604_p5 }
  0x33   :  { %612 = shalt.err (!%p609_p7)
}
  0x34   :  { %s613_s1 = scalar_lea.vmem %s58_s21, 1024  ;;  %p618_p9 = scmp.lt.s32.totalorder %s58_s21, %s58_s21 }
  0x35   :  { %p614_p8 = scmp.ne.s32.totalorder %s58_s21, %s613_s1  ;;  %p619_p10 = scmp.lt.s32.totalorder %s613_s1, %s613_s1 }
  0x37   :  { %p620_p11 = por %p619_p10, %p618_p9 }
  0x39   :  { %p621_p12 = pnand %p620_p11, %p614_p8 }
  0x3b   :  { %624 = shalt.err (!%p621_p12)
}
  0x3c   :  { %63 = dma.hbm_to_vmem [thread:$0]  %s853_s4, 1024, %s58_s21, [#allocation8], %s681_s17, %s681_s17, %s682_s18  }
  0x3d   :  { %s625_s12 = scalar_lea.hbm %s855_s6, 1024 }
  0x3e   :  { %p626_p13 = scmp.ne.s32.totalorder %s855_s6, %s625_s12  ;;  %p629_p0 = scmp.lt.u32.totalorder %s625_s12, %s855_s6 }
  0x40   :  { %p631_p1 = pnand %p629_p0, %p626_p13 }
  0x42   :  { %634 = shalt.err (!%p631_p1)
}
  0x43   :  { %s635_s0 = scalar_lea.vmem %s72_s23, 1024  ;;  %p640_p3 = scmp.lt.s32.totalorder %s72_s23, %s72_s23 }
  0x44   :  { %p636_p2 = scmp.ne.s32.totalorder %s72_s23, %s635_s0  ;;  %p641_p4 = scmp.lt.s32.totalorder %s635_s0, %s635_s0 }
  0x46   :  { %p642_p5 = por %p641_p4, %p640_p3 }
  0x48   :  { %p643_p6 = pnand %p642_p5, %p636_p2 }
  0x4a   :  { %646 = shalt.err (!%p643_p6)
}
  0x4b   :  { %77 = dma.hbm_to_vmem [thread:$0]  %s855_s6, 1024, %s72_s23, [#allocation11], %s681_s17, %s681_s17, %s682_s18  }
  0x4c   :  { %669 = dma.done.wait [#allocation5], 16  }
  0x4d   :  { %670 = vsyncadd [#allocation5], 4294967280 }
  0x4e   :  { %671 = dma.done.wait [#allocation3], 128  }
  0x4f   :  { %672 = vsyncadd [#allocation3], 4294967168 }
  0x50   :  { %673 = dma.done.wait [#allocation8], 1152  }
  0x51   :  { %674 = vsyncadd [#allocation8], 4294966144 }
  0x52   :  { %675 = dma.done.wait [#allocation11], 1024  }
  0x53   :  { %676 = vsyncadd [#allocation11], 4294966272 }
  0x54   :  { %95 = sfence }
  0x55   :  { %v527_v0 = vld [vmem:[#allocation7] sm:$0xff]   ;;  %v686_v1 = vmov 0.0   ;;  %v528_v2 = vld [vmem:[#allocation6] sm:$0xff]   ;;  %vm687_vm0 = vmmov 0   ;;  %vm121_vm1 = vcmask 130048   ;;  %v529_v3 = vld [vmem:[#allocation9] sm:$0xff]  }
  0x56   :  { %469 = vmatprep.subr.bf16.mxu0 %v686_v1  ;;  %475 = vmatprep.subr.bf16.mxu1 %v686_v1  ;;  %v530_v4 = vld [vmem:[#allocation9 + $0x8] sm:$0xff]   ;;  %v531_v5 = vld [vmem:[#allocation9 + $0x10] sm:$0xff]   ;;  %v532_v6 = vld [vmem:[#allocation9 + $0x18] sm:$0xff]   ;;  %s426_s22 = sld [smem:[#allocation2 + $0x1]]  ;;  %s688_s23 = smov [#allocation12]  }
  0x57   :  { %470 = vmatpush3.bf16.msra.mxu0 %v527_v0  ;;  %471 = vmatprep.mubr.msk.bf16.mxu0 %vm687_vm0, %v686_v1  ;;  %v533_v7 = vld [vmem:[#allocation9 + $0x20] sm:$0xff]   ;;  %v534_v8 = vld [vmem:[#allocation9 + $0x28] sm:$0xff]   ;;  %v535_v9 = vld [vmem:[#allocation9 + $0x30] sm:$0xff]   ;;  %s411_s24 = sshll.u32 %s688_s23, 4  ;;  %s412_s24 = int_to_ptr.vmem [resolvable:$true] %s411_s24 }
  0x58   :  { %491 = vmatprep.mubr.msk.bf16.mxu1 %vm687_vm0, %v686_v1  ;;  %495 = vmatprep.subr.bf16.mxu0 %v686_v1  ;;  %v536_v10 = vld [vmem:[#allocation9 + $0x38] sm:$0xff]   ;;  %v537_v11 = vld [vmem:[#allocation10] sm:$0xff]   ;;  %v538_v12 = vld [vmem:[#allocation10 + $0x8] sm:$0xff]   ;;  %p652_p8 = scmp.lt.s32.totalorder %s412_s24, %s412_s24 }
  0x59   :  { %476 = vmatpush3.bf16.msra.mxu1 %v529_v3  ;;  %v539_v13 = vld [vmem:[#allocation10 + $0x10] sm:$0xff]   ;;  %v540_v14 = vld [vmem:[#allocation10 + $0x18] sm:$0xff]   ;;  %v541_v15 = vld [vmem:[#allocation10 + $0x20] sm:$0xff]  }
  0x5a   :  { %472 = vmatmul.mubr.msk.bf16.vlgmr.msra.gmra.mrb[0].mxu0 %vm121_vm1, %v528_v2  ;;  %477 = vmatprep.subr.bf16.mxu1 %v686_v1  ;;  %v542_v16 = vld [vmem:[#allocation10 + $0x28] sm:$0xff]   ;;  %v427_v17 = vld [vmem:[%s852_s3] ss:$0 sm:$0xff]  ;;  %v544_v28 = vld [vmem:[#allocation10 + $0x38] sm:$0xff]  }
  0x5b   :  { %511 = vmatprep.mubr.msk.bf16.mxu0 %vm687_vm0, %v686_v1  ;;  %496 = vmatpush3.bf16.msra.mxu0 %v537_v11  ;;  %v543_v27 = vld [vmem:[#allocation10 + $0x30] sm:$0xff]  }
  0x5c   :  { %497 = vmatprep.subr.bf16.mxu0 %v686_v1  ;;  %v431_v29 = vld [vmem:[%s854_s5] ss:$0 sm:$0xff]  ;;  %s97_s5 = sld [smem:[#allocation2]]  ;;  %v401_v48 = vstv %s426_s22 }
  0x5d   :  { %478 = vmatpush3.bf16.msra.mxu1 %v530_v4  ;;  %v440_v39 = vld [vmem:[%s856_s7] ss:$0 sm:$0xff]  ;;  %s647_s7 = scalar_lea.vmem %s412_s24, 256 }
  0x5e   :  { %479 = vmatprep.subr.bf16.mxu1 %v686_v1  ;;  %p648_p7 = scmp.ne.s32.totalorder %s412_s24, %s647_s7  ;;  %p653_p9 = scmp.lt.s32.totalorder %s647_s7, %s647_s7 }
  0x5f   :  { %498 = vmatpush3.bf16.msra.mxu0 %v538_v12 }
  0x60   :  { %499 = vmatprep.subr.bf16.mxu0 %v686_v1  ;;  %p654_p10 = por %p653_p9, %p652_p8 }
  0x61   :  { %480 = vmatpush3.bf16.msra.mxu1 %v531_v5 }
  0x62   :  { %481 = vmatprep.subr.bf16.mxu1 %v686_v1  ;;  %v398_v46 = vstv %s97_s5  ;;  %p655_p11 = pnand %p654_p10, %p648_p7 }
  0x63   :  { %500 = vmatpush3.bf16.msra.mxu0 %v539_v13 }
  0x64   :  { %501 = vmatprep.subr.bf16.mxu0 %v686_v1 }
  0x65   :  { %482 = vmatpush3.bf16.msra.mxu1 %v532_v6 }
  0x66   :  { %483 = vmatprep.subr.bf16.mxu1 %v686_v1 }
  0x67   :  { %502 = vmatpush3.bf16.msra.mxu0 %v540_v14 }
  0x68   :  { %503 = vmatprep.subr.bf16.mxu0 %v686_v1 }
  0x69   :  { %484 = vmatpush3.bf16.msra.mxu1 %v533_v7 }
  0x6a   :  { %485 = vmatprep.subr.bf16.mxu1 %v686_v1 }
  0x6b   :  { %504 = vmatpush3.bf16.msra.mxu0 %v541_v15 }
  0x6c   :  { %505 = vmatprep.subr.bf16.mxu0 %v686_v1 }
  0x6d   :  { %486 = vmatpush3.bf16.msra.mxu1 %v534_v8 }
  0x6e   :  { %487 = vmatprep.subr.bf16.mxu1 %v686_v1 }
  0x6f   :  { %506 = vmatpush3.bf16.msra.mxu0 %v542_v16 }
  0x70   :  { %507 = vmatprep.subr.bf16.mxu0 %v686_v1 }
  0x71   :  { %488 = vmatpush3.bf16.msra.mxu1 %v535_v9 }
  0x72   :  { %489 = vmatprep.subr.bf16.mxu1 %v686_v1 }
  0x73   :  { %508 = vmatpush3.bf16.msra.mxu0 %v543_v27 }
  0x74   :  { %509 = vmatprep.subr.bf16.mxu0 %v686_v1 }
  0x75   :  { %490 = vmatpush3.bf16.msra.mxu1 %v536_v10 }
  0x77   :  { %510 = vmatpush3.bf16.msra.mxu0 %v544_v28 }
 0x12d   :  { %v159_v18 = vpop.f32.mrb[0].mxu0 }
 0x12e   :  { %v160_v19 = vadd.f32 %v427_v17, %v159_v18  ;;  %v473_v20 = vpop.f32.mrb[1].mxu0 }
 0x12f   :  { %v162_v21 = vpop.f32.mrb[2].mxu0 }
 0x130   :  { %v163_v22 = vadd.f32 %v427_v17, %v162_v21  ;;  %v474_v23 = vpop.f32.mrb[3].mxu0  ;;  %v166_v24 = vmax.f32 %v160_v19, 0.0 }
 0x132   :  { %v167_v25 = vmax.f32 %v163_v22, 0.0 }
 0x134   :  { %v168_v26 = vpack.c.bf16 %v167_v25, %v166_v24 }
 0x136   :  { %492 = vmatmul.mubr.bf16.vlgmr.msra.gmra.mrb[0].mxu1 %v168_v26 }
 0x209   :  { %v274_v30 = vpop.f32.mrb[0].mxu1 }
 0x20a   :  { %v275_v31 = vadd.f32 %v431_v29, %v274_v30  ;;  %v493_v32 = vpop.f32.mrb[1].mxu1 }
 0x20b   :  { %v277_v33 = vpop.f32.mrb[2].mxu1 }
 0x20c   :  { %v278_v34 = vadd.f32 %v431_v29, %v277_v33  ;;  %v494_v35 = vpop.f32.mrb[3].mxu1  ;;  %v281_v36 = vmax.f32 %v275_v31, 0.0 }
 0x20e   :  { %v282_v37 = vmax.f32 %v278_v34, 0.0 }
 0x210   :  { %v283_v38 = vpack.c.bf16 %v282_v37, %v281_v36 }
 0x212   :  { %512 = vmatmul.mubr.bf16.vlgmr.msra.gmra.mrb[4].mxu0 %v283_v38 }
 0x2e5   :  { %v389_v40 = vpop.f32.mrb[4].mxu0 }
 0x2e6   :  { %v390_v41 = vadd.f32 %v440_v39, %v389_v40  ;;  %v513_v42 = vpop.f32.mrb[5].mxu0 }
 0x2e7   :  { %v392_v43 = vpop.f32.mrb[6].mxu0 }
 0x2e8   :  { %545 = vtanh.f32 %v390_v41  ;;  %v393_v44 = vadd.f32 %v440_v39, %v392_v43  ;;  %v514_v45 = vpop.f32.mrb[7].mxu0 }
 0x2ea   :  { %547 = vtanh.f32 %v393_v44 }
 0x2f2   :  { %v546_v47 = vpop.eup %545 }
 0x2f3   :  { %v399_v49 = vmul.f32 %v546_v47, %v398_v46 }
 0x2f4   :  { %v548_v50 = vpop.eup %547 }
 0x2f5   :  { %v400_v51 = vmul.f32 %v548_v50, %v398_v46  ;;  %v402_v52 = vadd.f32 %v401_v48, %v399_v49 }
 0x2f7   :  { %v403_v53 = vadd.f32 %v401_v48, %v400_v51  ;;  %404 = vst [vmem:[#allocation12] sm:$0xff] %v402_v52 }
 0x2f9   :  { %405 = vst [vmem:[#allocation12 + $0x8] sm:$0xff] %v403_v53 }
 0x2fa   :  { %658 = shalt.err (!%p655_p11)
}
 0x2fb   :  { %s659_s27 = scalar_lea.hbm %s857_s8, 256 }
 0x2fc   :  { %p660_p12 = scmp.ne.s32.totalorder %s857_s8, %s659_s27  ;;  %p663_p13 = scmp.lt.u32.totalorder %s659_s27, %s857_s8 }
 0x2fe   :  { %p665_p0 = pnand %p663_p13, %p660_p12 }
 0x300   :  { %668 = shalt.err (!%p665_p0)
}
 0x301   :  { %s689_s30 = smov 128   ;;  %s690_s2 = smov 8  }
 0x302   :  { %417 = dma.vmem_to_hbm [thread:$0]  %s412_s24, 256, %s857_s8, [#allocation4], %s689_s30, %s689_s30, %s690_s2  }
 0x303   :  { %677 = dma.done.wait [#allocation4], 256  }
 0x304   :  { %678 = vsyncadd [#allocation4], 4294967040 }
 0x305   :  { %421 = vsyncpa [#allocation3], 1 }
 0x306   :  { %422 = vsyncpa [#allocation8], 1 }
 0x307   :  { %423 = vsyncpa [#allocation11], 1 }
 0x308   :  { %424 = vsyncpa [#allocation4], 1 }
 0x309   :  { %425 = vsyncpa [#allocation5], 1 }

</bundles_post_ra>
